<compile_context>
chip_gen: v6e
topology: v6e:2x2x1
jax: 0.10.0
libtpu: 0.0.40
codegen_flags: <defaults>
</compile_context>

<pallas_src>
import jax
import jax.numpy as jnp
from jax import lax
from jax.experimental import pallas as pl
from jax.experimental.pallas import tpu as pltpu

TB = 128  # batch block size = lane width multiple


def _fused_kernel(x_ref, wd_ref, b96_ref, wl_ref, bl_ref, out_ref):
    # x_ref  : (64, TB)   VMEM  -- flattened 8x8 images, batch on lanes
    # wd_ref : (384, 64)  VMEM  -- dense conv matrix, rows ordered (pool-pos, c, ph, pw)
    # b96_ref: (96, 1)    VMEM  -- conv bias broadcast to (c, ph, pw) rows
    # wl_ref : (12, 96)   VMEM  -- linear weight (PyTorch layout, unchanged)
    # bl_ref : (12, 1)    VMEM  -- linear bias
    # out_ref: (12, TB)   VMEM  -- output, batch on lanes

    # ---- conv as one MXU matmul: (384, 64) @ (64, TB) ----
    conv = jnp.dot(wd_ref[...], x_ref[...], preferred_element_type=jnp.float32)

    # ---- 2x2 max-pool: rows [g*96:(g+1)*96] hold pool-window position g=(i*2+j) ----
    pooled = jnp.maximum(jnp.maximum(conv[0:96, :], conv[96:192, :]),
                         jnp.maximum(conv[192:288, :], conv[288:384, :]))   # (96, TB)

    # ---- conv bias + ReLU (commute with the max since bias is constant per window) ----
    act = jnp.maximum(pooled + b96_ref[...], 0.0)

    # ---- linear layer on the MXU: (12, 96) @ (96, TB) + bias ----
    out_ref[...] = (jnp.dot(wl_ref[...], act, preferred_element_type=jnp.float32)
                    + bl_ref[...])


def _dense_conv_matrix(w_conv):
    """Scatter the (6,1,5,5) conv weights into a dense (384, 64) matrix.

    Row r = (2*(h%2) + (w%2))*96 + c*16 + (h//2)*4 + (w//2) for conv output (c, h, w);
    column = hi*8 + wi for input pixel (hi, wi).  Indices are static Python constants;
    only the tiny gather/scatter of the 150 weight values is traced.
    """
    rows, cols, widx = [], [], []
    for c in range(6):
        for h in range(8):
            for w in range(8):
                r = (2 * (h % 2) + (w % 2)) * 96 + c * 16 + (h // 2) * 4 + (w // 2)
                for kh in range(5):
                    for kw in range(5):
                        hi, wi = h + kh - 2, w + kw - 2
                        if 0 <= hi < 8 and 0 <= wi < 8:
                            rows.append(r)
                            cols.append(hi * 8 + wi)
                            widx.append((c * 5 + kh) * 5 + kw)
    vals = w_conv.astype(jnp.float32).reshape(-1)[jnp.array(widx)]
    return (jnp.zeros((384, 64), jnp.float32)
            .at[jnp.array(rows), jnp.array(cols)].set(vals))


def cnn_encoder_forward(x, w_conv, b_conv, w_lin, b_lin, *, tb=TB):
    """Pallas implementation of CNNEncoder.forward.  x: (B, 1, 8, 8) float32 -> (B, 12)."""
    assert tb % 128 == 0
    B = x.shape[0]
    Bp = ((B + tb - 1) // tb) * tb

    # ---- tiny trace-time layout plumbing (O(B*64) floats + weight packing) ----
    xf = jnp.pad(x.reshape(B, 64).astype(jnp.float32), ((0, Bp - B), (0, 0)))
    xT = xf.T                                               # (64, Bp), batch on lanes

    wd = _dense_conv_matrix(w_conv)                         # (384, 64)
    b96 = jnp.repeat(b_conv.astype(jnp.float32), 16).reshape(96, 1)
    wl = w_lin.astype(jnp.float32)                          # (12, 96) PyTorch layout
    bl = b_lin.astype(jnp.float32).reshape(12, 1)

    grid = (Bp // tb,)
    flops = 2 * Bp * (384 * 64 + 12 * 96) + Bp * (4 * 96)
    bytes_accessed = Bp * (64 + 12) * 4 + (384 * 64 + 96 + 12 * 96 + 12) * 4

    out_t = pl.pallas_call(
        _fused_kernel,
        out_shape=jax.ShapeDtypeStruct((12, Bp), jnp.float32),
        grid=grid,
        in_specs=[
            pl.BlockSpec((64, tb), lambda b: (0, b)),       # input block
            pl.BlockSpec((384, 64), lambda b: (0, 0)),      # dense conv matrix
            pl.BlockSpec((96, 1), lambda b: (0, 0)),        # conv bias (per pooled row)
            pl.BlockSpec((12, 96), lambda b: (0, 0)),       # linear weight
            pl.BlockSpec((12, 1), lambda b: (0, 0)),        # linear bias
        ],
        out_specs=pl.BlockSpec((12, tb), lambda b: (0, b)),
        compiler_params=pltpu.CompilerParams(
            dimension_semantics=("parallel",)),
        cost_estimate=pl.CostEstimate(
            flops=flops, transcendentals=0, bytes_accessed=bytes_accessed),
    )(xT, wd, b96, wl, bl)

    return out_t[:, :B].T                                   # (B, 12)


def reference_forward(x, w_conv, b_conv, w_lin, b_lin):
    """Pure-JAX reference matching the PyTorch module exactly."""
    conv = lax.conv_general_dilated(
        x, w_conv, window_strides=(1, 1), padding=((2, 2), (2, 2)),
        dimension_numbers=("NCHW", "OIHW", "NCHW"))
    act = jnp.maximum(conv + b_conv.reshape(1, 6, 1, 1), 0.0)
    pooled = lax.reduce_window(act, -jnp.inf, lax.max,
                               (1, 1, 2, 2), (1, 1, 2, 2), "VALID")
    flat = pooled.reshape(x.shape[0], 6 * 4 * 4)
    return flat @ w_lin.T + b_lin


if __name__ == "__main__":
    key = jax.random.PRNGKey(0)
    kx, k1, k2, k3, k4 = jax.random.split(key, 5)

    B = 2
    # Input implied by the module: 6*4*4 flatten after pool(2) => 8x8 spatial, 1 channel.
    x = jax.random.normal(kx, (B, 1, 8, 8), dtype=jnp.float32)

    # Deterministic parameter init (PyTorch-style uniform(-1/sqrt(fan_in), +1/sqrt(fan_in)))
    s_conv = 1.0 / (1 * 5 * 5) ** 0.5
    w_conv = jax.random.uniform(k1, (6, 1, 5, 5), jnp.float32, -s_conv, s_conv)
    b_conv = jax.random.uniform(k2, (6,), jnp.float32, -s_conv, s_conv)
    s_lin = 1.0 / (6 * 4 * 4) ** 0.5
    w_lin = jax.random.uniform(k3, (12, 96), jnp.float32, -s_lin, s_lin)
    b_lin = jax.random.uniform(k4, (12,), jnp.float32, -s_lin, s_lin)

    out = jax.jit(cnn_encoder_forward)(x, w_conv, b_conv, w_lin, b_lin)
    out = jax.block_until_ready(out)

    ref = reference_forward(x, w_conv, b_conv, w_lin, b_lin)
    assert out.shape == (B, 12), out.shape
    assert jnp.allclose(out, ref, atol=1e-4, rtol=1e-4), (out, ref)
    print("KERNEL_OK")
</pallas_src>

<mosaic_0001>
module attributes {stable_mosaic.version = 11 : i64} {
  func.func @_fused_kernel(%arg0: i32, %arg1: memref<64x128xf32, #tpu.memory_space<vmem>>, %arg2: memref<384x64xf32, #tpu.memory_space<vmem>>, %arg3: memref<96x1xf32, #tpu.memory_space<vmem>>, %arg4: memref<12x96xf32, #tpu.memory_space<vmem>>, %arg5: memref<12x1xf32, #tpu.memory_space<vmem>>, %arg6: memref<12x128xf32, #tpu.memory_space<vmem>>) attributes {dimension_semantics = [#tpu.dimension_semantics<parallel>], iteration_bounds = array<i64: 1>, scalar_prefetch = 0 : i64, scratch_operands = 0 : i64, tpu.core_type = #tpu.core_type<tc>, window_params = [{transform_indices = @transform_0, window_bounds = array<i64: 64, 128>}, {pipeline_mode = #tpu.pipeline_mode<synchronous>, transform_indices = @transform_1, window_bounds = array<i64: 384, 64>}, {pipeline_mode = #tpu.pipeline_mode<synchronous>, transform_indices = @transform_2, window_bounds = array<i64: 96, 1>}, {pipeline_mode = #tpu.pipeline_mode<synchronous>, transform_indices = @transform_3, window_bounds = array<i64: 12, 96>}, {pipeline_mode = #tpu.pipeline_mode<synchronous>, transform_indices = @transform_4, window_bounds = array<i64: 12, 1>}, {transform_indices = @transform_5, window_bounds = array<i64: 12, 128>}]} {
    %c0 = arith.constant 0 : index
    %c0_0 = arith.constant 0 : index
    %0 = vector.load %arg2[%c0, %c0_0] : memref<384x64xf32, #tpu.memory_space<vmem>>, vector<384x64xf32>
    %c0_1 = arith.constant 0 : index
    %c0_2 = arith.constant 0 : index
    %1 = vector.load %arg1[%c0_1, %c0_2] : memref<64x128xf32, #tpu.memory_space<vmem>>, vector<64x128xf32>
    %cst = arith.constant dense<0.000000e+00> : vector<384x128xf32>
    %2 = tpu.matmul %0, %1, %cst {dimension_numbers = #tpu.dot_dimension_numbers<[1], [0], [0], [1], [0, 0, 1, 1], [], []>} : vector<384x64xf32>, vector<64x128xf32>, vector<384x128xf32> -> vector<384x128xf32>
    %3 = vector.extract_strided_slice %2 {offsets = [0, 0], sizes = [96, 128], strides = [1, 1]} : vector<384x128xf32> to vector<96x128xf32>
    %4 = vector.extract_strided_slice %2 {offsets = [96, 0], sizes = [96, 128], strides = [1, 1]} : vector<384x128xf32> to vector<96x128xf32>
    %5 = arith.maximumf %3, %4 : vector<96x128xf32>
    %6 = vector.extract_strided_slice %2 {offsets = [192, 0], sizes = [96, 128], strides = [1, 1]} : vector<384x128xf32> to vector<96x128xf32>
    %7 = vector.extract_strided_slice %2 {offsets = [288, 0], sizes = [96, 128], strides = [1, 1]} : vector<384x128xf32> to vector<96x128xf32>
    %8 = arith.maximumf %6, %7 : vector<96x128xf32>
    %9 = arith.maximumf %5, %8 : vector<96x128xf32>
    %c0_3 = arith.constant 0 : index
    %c0_4 = arith.constant 0 : index
    %10 = vector.load %arg3[%c0_3, %c0_4] : memref<96x1xf32, #tpu.memory_space<vmem>>, vector<96x1xf32>
    %11 = vector.broadcast %10 : vector<96x1xf32> to vector<96x128xf32>
    %12 = arith.addf %9, %11 : vector<96x128xf32>
    %cst_5 = arith.constant 0.000000e+00 : f32
    %13 = vector.broadcast %cst_5 : f32 to vector<96x128xf32>
    %14 = arith.maximumf %12, %13 : vector<96x128xf32>
    %c0_6 = arith.constant 0 : index
    %c0_7 = arith.constant 0 : index
    %15 = vector.load %arg4[%c0_6, %c0_7] : memref<12x96xf32, #tpu.memory_space<vmem>>, vector<12x96xf32>
    %cst_8 = arith.constant dense<0.000000e+00> : vector<12x128xf32>
    %16 = tpu.matmul %15, %14, %cst_8 {dimension_numbers = #tpu.dot_dimension_numbers<[1], [0], [0], [1], [0, 0, 1, 1], [], []>} : vector<12x96xf32>, vector<96x128xf32>, vector<12x128xf32> -> vector<12x128xf32>
    %c0_9 = arith.constant 0 : index
    %c0_10 = arith.constant 0 : index
    %17 = vector.load %arg5[%c0_9, %c0_10] : memref<12x1xf32, #tpu.memory_space<vmem>>, vector<12x1xf32>
    %18 = vector.broadcast %17 : vector<12x1xf32> to vector<12x128xf32>
    %19 = arith.addf %16, %18 : vector<12x128xf32>
    %c0_11 = arith.constant 0 : index
    %c0_12 = arith.constant 0 : index
    %20 = vector.load %arg6[%c0_11, %c0_12] : memref<12x128xf32, #tpu.memory_space<vmem>>, vector<12x128xf32>
    tpu.vector_store %arg6[%c0_11, %c0_12], %19 {strides = array<i32>} : memref<12x128xf32, #tpu.memory_space<vmem>>, vector<12x128xf32>,
    return
  }
  func.func @transform_0(%arg0: i32) -> (i32, i32) {
    %c0_i32 = arith.constant 0 : i32
    %c0_i32_0 = arith.constant 0 : i32
    return %c0_i32, %arg0 : i32, i32
  }
  func.func @transform_1(%arg0: i32) -> (i32, i32) {
    %c0_i32 = arith.constant 0 : i32
    %c0_i32_0 = arith.constant 0 : i32
    %c0_i32_1 = arith.constant 0 : i32
    return %c0_i32, %c0_i32_0 : i32, i32
  }
  func.func @transform_2(%arg0: i32) -> (i32, i32) {
    %c0_i32 = arith.constant 0 : i32
    %c0_i32_0 = arith.constant 0 : i32
    %c0_i32_1 = arith.constant 0 : i32
    return %c0_i32, %c0_i32_0 : i32, i32
  }
  func.func @transform_3(%arg0: i32) -> (i32, i32) {
    %c0_i32 = arith.constant 0 : i32
    %c0_i32_0 = arith.constant 0 : i32
    %c0_i32_1 = arith.constant 0 : i32
    return %c0_i32, %c0_i32_0 : i32, i32
  }
  func.func @transform_4(%arg0: i32) -> (i32, i32) {
    %c0_i32 = arith.constant 0 : i32
    %c0_i32_0 = arith.constant 0 : i32
    %c0_i32_1 = arith.constant 0 : i32
    return %c0_i32, %c0_i32_0 : i32, i32
  }
  func.func @transform_5(%arg0: i32) -> (i32, i32) {
    %c0_i32 = arith.constant 0 : i32
    %c0_i32_0 = arith.constant 0 : i32
    return %c0_i32, %arg0 : i32, i32
  }
}

</mosaic_0001>

<bundles_post_ra>
// kernel: cnn_encoder_forward.1
= control target key start
LH: loop header
LB: loop body
LE: loop exit
PB: predicated region body
PF: predicated region fallthrough
CT: control target
= control target key end

     0   :  { %v1014_v2 = vmov 0   ;;  %vm76_vm0 = vcmask 523264   ;;  %vm672_vm1 = vcmask 785408   ;;  %s1380_s0 = inlined_call_operand.vmem [shape: f32[64,128], index: 0, kind: input, shape index: {}]   ;;  %s1381_s1 = inlined_call_operand.vmem [shape: f32[384,64], index: 1, kind: input, shape index: {}]   ;;  %s1382_s2 = inlined_call_operand.vmem [shape: f32[96,1], index: 2, kind: input, shape index: {}]   ;;  %s1383_s4 = inlined_call_operand.vmem [shape: f32[12,1], index: 4, kind: input, shape index: {}]   ;;  %s1384_s3 = inlined_call_operand.vmem [shape: f32[12,96], index: 3, kind: input, shape index: {}]   ;;  %s1385_s5 = inlined_call_operand.vmem [shape: f32[12,128], index: 5, kind: output, shape index: {}]  }
   0x1   :  { %v75_v0 = vld [vmem:[%s1380_s0 + $0x38] sm:$0xff]  ;;  %v74_v1 = vld [vmem:[%s1380_s0 + $0x30] sm:$0xff]  ;;  %1012 = vset.pattern.permute.xlu0 %v1014_v2  ;;  %1013 = vset.pattern.permute.xlu1 %v1014_v2  ;;  %v73_v3 = vld [vmem:[%s1380_s0 + $0x28] sm:$0xff] }
   0x2   :  { %880 = vmatprep.subr.mxu0 %v75_v0  ;;  %995 = vmatprep.subr.mxu1 %v75_v0  ;;  %v72_v4 = vld [vmem:[%s1380_s0 + $0x20] sm:$0xff]  ;;  %v71_v5 = vld [vmem:[%s1380_s0 + $0x18] sm:$0xff]  ;;  %v70_v6 = vld [vmem:[%s1380_s0 + $0x10] sm:$0xff] }
   0x3   :  { %881 = vmatpush3.msra.mxu0 %v75_v0  ;;  %1003 = vmatpush3.msra.mxu1 %v75_v0  ;;  %v69_v7 = vld [vmem:[%s1380_s0 + $0x8] sm:$0xff]  ;;  %v68_v8 = vld [vmem:[%s1380_s0] sm:$0xff]  ;;  %v46_v10 = vld [vmem:[%s1381_s1 + $0xd0] sm:$0xff] }
   0x4   :  { %882 = vmatprep.subr.mxu0 %v74_v1  ;;  %996 = vmatprep.subr.mxu1 %v74_v1  ;;  %v20_v9 = vld [vmem:[%s1381_s1] sm:$0xff]  ;;  %v21_v11 = vld [vmem:[%s1381_s1 + $0x8] sm:$0xff]  ;;  %v47_v12 = vld [vmem:[%s1381_s1 + $0xd8] sm:$0xff] }
   0x5   :  { %883 = vmatpush3.msra.mxu0 %v74_v1  ;;  %1004 = vmatpush3.msra.mxu1 %v74_v1  ;;  %v22_v13 = vld [vmem:[%s1381_s1 + $0x10] sm:$0xff]  ;;  %v48_v14 = vld [vmem:[%s1381_s1 + $0xe0] sm:$0xff]  ;;  %v573_v15 = vld [vmem:[%s1382_s2 + $0x58] sm:$0xff] }
   0x6   :  { %884 = vmatprep.subr.mxu0 %v73_v3  ;;  %997 = vmatprep.subr.mxu1 %v73_v3  ;;  %v23_v16 = vld [vmem:[%s1381_s1 + $0x18] sm:$0xff]  ;;  %v49_v17 = vld [vmem:[%s1381_s1 + $0xe8] sm:$0xff]  ;;  %v24_v19 = vld [vmem:[%s1381_s1 + $0x20] sm:$0xff] }
   0x7   :  { %885 = vmatpush3.msra.mxu0 %v73_v3  ;;  %1005 = vmatpush3.msra.mxu1 %v73_v3  ;;  %v571_v18 = vld [vmem:[%s1382_s2 + $0x48] sm:$0xff]  ;;  %v50_v20 = vld [vmem:[%s1381_s1 + $0xf0] sm:$0xff]  ;;  %v570_v22 = vld [vmem:[%s1382_s2 + $0x40] sm:$0xff] }
   0x8   :  { %886 = vmatprep.subr.mxu0 %v72_v4  ;;  %998 = vmatprep.subr.mxu1 %v72_v4  ;;  %v572_v21 = vld [vmem:[%s1382_s2 + $0x50] sm:$0xff]  ;;  %v25_v23 = vld [vmem:[%s1381_s1 + $0x28] sm:$0xff]  ;;  %v51_v24 = vld [vmem:[%s1381_s1 + $0xf8] sm:$0xff] }
   0x9   :  { %887 = vmatpush3.msra.mxu0 %v72_v4  ;;  %1006 = vmatpush3.msra.mxu1 %v72_v4  ;;  %v26_v25 = vld [vmem:[%s1381_s1 + $0x30] sm:$0xff]  ;;  %v52_v26 = vld [vmem:[%s1381_s1 + $0x100] sm:$0xff]  ;;  %v569_v27 = vld [vmem:[%s1382_s2 + $0x38] sm:$0xff] }
   0xa   :  { %888 = vmatprep.subr.mxu0 %v71_v5  ;;  %999 = vmatprep.subr.mxu1 %v71_v5  ;;  %v568_v28 = vld [vmem:[%s1382_s2 + $0x30] sm:$0xff]  ;;  %v27_v29 = vld [vmem:[%s1381_s1 + $0x38] sm:$0xff]  ;;  %v53_v30 = vld [vmem:[%s1381_s1 + $0x108] sm:$0xff] }
   0xb   :  { %889 = vmatpush3.msra.mxu0 %v71_v5  ;;  %1007 = vmatpush3.msra.mxu1 %v71_v5  ;;  %v28_v31 = vld [vmem:[%s1381_s1 + $0x40] sm:$0xff]  ;;  %v54_v32 = vld [vmem:[%s1381_s1 + $0x110] sm:$0xff]  ;;  %v567_v33 = vld [vmem:[%s1382_s2 + $0x28] sm:$0xff] }
   0xc   :  { %890 = vmatprep.subr.mxu0 %v70_v6  ;;  %1000 = vmatprep.subr.mxu1 %v70_v6  ;;  %v566_v34 = vld [vmem:[%s1382_s2 + $0x20] sm:$0xff]  ;;  %v29_v35 = vld [vmem:[%s1381_s1 + $0x48] sm:$0xff]  ;;  %v55_v36 = vld [vmem:[%s1381_s1 + $0x118] sm:$0xff] }
   0xd   :  { %891 = vmatpush3.msra.mxu0 %v70_v6  ;;  %1008 = vmatpush3.msra.mxu1 %v70_v6  ;;  %v30_v37 = vld [vmem:[%s1381_s1 + $0x50] sm:$0xff]  ;;  %v56_v38 = vld [vmem:[%s1381_s1 + $0x120] sm:$0xff]  ;;  %v565_v39 = vld [vmem:[%s1382_s2 + $0x18] sm:$0xff] }
   0xe   :  { %892 = vmatprep.subr.mxu0 %v69_v7  ;;  %1001 = vmatprep.subr.mxu1 %v69_v7  ;;  %v564_v40 = vld [vmem:[%s1382_s2 + $0x10] sm:$0xff]  ;;  %v31_v41 = vld [vmem:[%s1381_s1 + $0x58] sm:$0xff]  ;;  %v57_v42 = vld [vmem:[%s1381_s1 + $0x128] sm:$0xff] }
   0xf   :  { %893 = vmatpush3.msra.mxu0 %v69_v7  ;;  %1009 = vmatpush3.msra.mxu1 %v69_v7  ;;  %v32_v43 = vld [vmem:[%s1381_s1 + $0x60] sm:$0xff]  ;;  %v58_v44 = vld [vmem:[%s1381_s1 + $0x130] sm:$0xff]  ;;  %v563_v45 = vld [vmem:[%s1382_s2 + $0x8] sm:$0xff] }
  0x10   :  { %894 = vmatprep.subr.mxu0 %v68_v8  ;;  %1002 = vmatprep.subr.mxu1 %v68_v8  ;;  %v562_v46 = vld [vmem:[%s1382_s2] sm:$0xff]  ;;  %v33_v47 = vld [vmem:[%s1381_s1 + $0x68] sm:$0xff]  ;;  %v59_v48 = vld [vmem:[%s1381_s1 + $0x138] sm:$0xff] }
  0x11   :  { %895 = vmatpush3.msra.mxu0 %v68_v8  ;;  %1010 = vmatpush3.msra.mxu1 %v68_v8  ;;  %v34_v49 = vld [vmem:[%s1381_s1 + $0x70] sm:$0xff]  ;;  %v60_v50 = vld [vmem:[%s1381_s1 + $0x140] sm:$0xff]  ;;  %v661_v52 = vld [vmem:[%s1383_s4 + $0x8] sm:$0xf] }
  0x12   :  { %896 = vmatprep.mubr.msk.f32.mxu0 %vm76_vm0, %v20_v9  ;;  %935 = vmatprep.mubr.msk.f32.mxu1 %vm76_vm0, %v46_v10  ;;  %v660_v51 = vld [vmem:[%s1383_s4] sm:$0xff]  ;;  %v35_v53 = vld [vmem:[%s1381_s1 + $0x78] sm:$0xff]  ;;  %v61_v54 = vld [vmem:[%s1381_s1 + $0x148] sm:$0xff] }
  0x13   :  { %897 = vmatmul.mubr.msk.f32.vlgmr.msra.gmra.mxu0 %vm76_vm0, %v21_v11  ;;  %936 = vmatmul.mubr.msk.f32.vlgmr.msra.gmra.mxu1 %vm76_vm0, %v47_v12  ;;  %v36_v55 = vld [vmem:[%s1381_s1 + $0x80] sm:$0xff]  ;;  %v62_v56 = vld [vmem:[%s1381_s1 + $0x150] sm:$0xff]  ;;  %v37_v57 = vld [vmem:[%s1381_s1 + $0x88] sm:$0xff] }
  0x14   :  { %899 = vmatprep.mubr.msk.f32.mxu0 %vm76_vm0, %v22_v13  ;;  %938 = vmatprep.mubr.msk.f32.mxu1 %vm76_vm0, %v48_v14  ;;  %v63_v58 = vld [vmem:[%s1381_s1 + $0x158] sm:$0xff]  ;;  %v38_v59 = vld [vmem:[%s1381_s1 + $0x90] sm:$0xff]  ;;  %v64_v60 = vld [vmem:[%s1381_s1 + $0x160] sm:$0xff] }
  0x15   :  { %631 = vperm.xlu0 %1012, %v573_v15   ;;  %621 = vperm.xlu1 %1013, %v571_v18   ;;  %v39_v61 = vld [vmem:[%s1381_s1 + $0x98] sm:$0xff]  ;;  %v65_v62 = vld [vmem:[%s1381_s1 + $0x168] sm:$0xff]  ;;  %v40_v63 = vld [vmem:[%s1381_s1 + $0xa0] sm:$0xff] }
  0x16   :  { %v66_v0 = vld [vmem:[%s1381_s1 + $0x170] sm:$0xff]  ;;  %v41_v1 = vld [vmem:[%s1381_s1 + $0xa8] sm:$0xff]  ;;  %v67_v2 = vld [vmem:[%s1381_s1 + $0x178] sm:$0xff] }
  0x17   :  { %900 = vmatmul.mubr.msk.f32.gmra.mxu0 %vm76_vm0, %v23_v16  ;;  %939 = vmatmul.mubr.msk.f32.gmra.mxu1 %vm76_vm0, %v49_v17  ;;  %v42_v3 = vld [vmem:[%s1381_s1 + $0xb0] sm:$0xff]  ;;  %v43_v4 = vld [vmem:[%s1381_s1 + $0xb8] sm:$0xff]  ;;  %v44_v5 = vld [vmem:[%s1381_s1 + $0xc0] sm:$0xff] }
  0x18   :  { %902 = vmatprep.mubr.msk.f32.mxu0 %vm76_vm0, %v24_v19  ;;  %941 = vmatprep.mubr.msk.f32.mxu1 %vm76_vm0, %v50_v20  ;;  %v45_v6 = vld [vmem:[%s1381_s1 + $0xc8] sm:$0xff]  ;;  %v658_v7 = vld [vmem:[%s1384_s3] sm:$0xff] }
  0x19   :  { %626 = vperm.xlu0 %1012, %v572_v21   ;;  %616 = vperm.xlu1 %1013, %v570_v22  }
  0x1b   :  { %903 = vmatmul.mubr.msk.f32.gmra.mxu0 %vm76_vm0, %v25_v23  ;;  %942 = vmatmul.mubr.msk.f32.gmra.mxu1 %vm76_vm0, %v51_v24 }
  0x1c   :  { %905 = vmatprep.mubr.msk.f32.mxu0 %vm76_vm0, %v26_v25  ;;  %944 = vmatprep.mubr.msk.f32.mxu1 %vm76_vm0, %v52_v26 }
  0x1d   :  { %611 = vperm.xlu0 %1012, %v569_v27   ;;  %606 = vperm.xlu1 %1013, %v568_v28  }
  0x1f   :  { %906 = vmatmul.mubr.msk.f32.gmra.mxu0 %vm76_vm0, %v27_v29  ;;  %945 = vmatmul.mubr.msk.f32.gmra.mxu1 %vm76_vm0, %v53_v30 }
  0x20   :  { %908 = vmatprep.mubr.msk.f32.mxu0 %vm76_vm0, %v28_v31  ;;  %947 = vmatprep.mubr.msk.f32.mxu1 %vm76_vm0, %v54_v32 }
  0x21   :  { %601 = vperm.xlu0 %1012, %v567_v33   ;;  %596 = vperm.xlu1 %1013, %v566_v34  }
  0x23   :  { %909 = vmatmul.mubr.msk.f32.gmra.mxu0 %vm76_vm0, %v29_v35  ;;  %948 = vmatmul.mubr.msk.f32.gmra.mxu1 %vm76_vm0, %v55_v36 }
  0x24   :  { %911 = vmatprep.mubr.msk.f32.mxu0 %vm76_vm0, %v30_v37  ;;  %950 = vmatprep.mubr.msk.f32.mxu1 %vm76_vm0, %v56_v38 }
  0x25   :  { %591 = vperm.xlu0 %1012, %v565_v39   ;;  %586 = vperm.xlu1 %1013, %v564_v40  }
  0x27   :  { %912 = vmatmul.mubr.msk.f32.gmra.mxu0 %vm76_vm0, %v31_v41  ;;  %951 = vmatmul.mubr.msk.f32.gmra.mxu1 %vm76_vm0, %v57_v42 }
  0x28   :  { %914 = vmatprep.mubr.msk.f32.mxu0 %vm76_vm0, %v32_v43  ;;  %953 = vmatprep.mubr.msk.f32.mxu1 %vm76_vm0, %v58_v44 }
  0x29   :  { %581 = vperm.xlu0 %1012, %v563_v45   ;;  %576 = vperm.xlu1 %1013, %v562_v46  }
  0x2b   :  { %915 = vmatmul.mubr.msk.f32.gmra.mxu0 %vm76_vm0, %v33_v47  ;;  %954 = vmatmul.mubr.msk.f32.gmra.mxu1 %vm76_vm0, %v59_v48 }
  0x2c   :  { %917 = vmatprep.mubr.msk.f32.mxu0 %vm76_vm0, %v34_v49  ;;  %956 = vmatprep.mubr.msk.f32.mxu1 %vm76_vm0, %v60_v50 }
  0x2d   :  { %664 = vperm.xlu0 %1012, %v660_v51   ;;  %669 = vperm.xlu1 %1013, %v661_v52  }
  0x2f   :  { %918 = vmatmul.mubr.msk.f32.gmra.mxu0 %vm76_vm0, %v35_v53  ;;  %957 = vmatmul.mubr.msk.f32.gmra.mxu1 %vm76_vm0, %v61_v54 }
  0x30   :  { %920 = vmatprep.mubr.msk.f32.mxu0 %vm76_vm0, %v36_v55  ;;  %959 = vmatprep.mubr.msk.f32.mxu1 %vm76_vm0, %v62_v56 }
  0x33   :  { %921 = vmatmul.mubr.msk.f32.gmra.mxu0 %vm76_vm0, %v37_v57  ;;  %960 = vmatmul.mubr.msk.f32.gmra.mxu1 %vm76_vm0, %v63_v58 }
  0x34   :  { %923 = vmatprep.mubr.msk.f32.mxu0 %vm76_vm0, %v38_v59  ;;  %962 = vmatprep.mubr.msk.f32.mxu1 %vm76_vm0, %v64_v60 }
  0x37   :  { %924 = vmatmul.mubr.msk.f32.gmra.mxu0 %vm76_vm0, %v39_v61  ;;  %963 = vmatmul.mubr.msk.f32.gmra.mxu1 %vm76_vm0, %v65_v62 }
  0x38   :  { %926 = vmatprep.mubr.msk.f32.mxu0 %vm76_vm0, %v40_v63  ;;  %965 = vmatprep.mubr.msk.f32.mxu1 %vm76_vm0, %v66_v0 }
  0x3b   :  { %927 = vmatmul.mubr.msk.f32.gmra.mxu0 %vm76_vm0, %v41_v1  ;;  %966 = vmatmul.mubr.msk.f32.gmra.mxu1 %vm76_vm0, %v67_v2 }
  0x3c   :  { %929 = vmatprep.mubr.msk.f32.mxu0 %vm76_vm0, %v42_v3  ;;  %992 = vmatprep.mubr.msk.f32.mxu1 %vm672_vm1, %v658_v7 }
  0x3f   :  { %930 = vmatmul.mubr.msk.f32.gmra.mxu0 %vm76_vm0, %v43_v4 }
  0x40   :  { %932 = vmatprep.mubr.msk.f32.mxu0 %vm76_vm0, %v44_v5 }
  0x43   :  { %933 = vmatmul.mubr.msk.f32.gmra.mxu0 %vm76_vm0, %v45_v6 }
  0x90   :  { %v632_v44 = vpop.permute.xlu0 %631  ;;  %v622_v47 = vpop.permute.xlu1 %621 }
  0x94   :  { %v627_v52 = vpop.permute.xlu0 %626  ;;  %v617_v54 = vpop.permute.xlu1 %616 }
  0x98   :  { %v612_v5 = vpop.permute.xlu0 %611 }
  0xd3   :  { %v1307_v8 = vpop.f32.mrf.mxu0  ;;  %v1309_v9 = vpop.f32.mrf.mxu1 }
  0xd5   :  { %v1311_v10 = vpop.f32.mrf.mxu0  ;;  %v1313_v11 = vpop.f32.mrf.mxu1 }
  0xd6   :  { %1386 = vst [vmem:[#allocation2_spill] sm:$0xff] %v1311_v10 }
  0xd7   :  { %v1315_v12 = vpop.f32.mrf.mxu0  ;;  %v1317_v13 = vpop.f32.mrf.mxu1 }
  0xd9   :  { %v1319_v14 = vpop.f32.mrf.mxu0  ;;  %v1321_v15 = vpop.f32.mrf.mxu1 }
  0xdb   :  { %v1323_v16 = vpop.f32.mrf.mxu0  ;;  %v943_v17 = vpop.f32.mrf.mxu1 }
  0xdd   :  { %v1325_v18 = vpop.f32.mrf.mxu0  ;;  %v1327_v19 = vpop.f32.mrf.mxu1 }
  0xdf   :  { %v907_v20 = vpop.f32.mrf.mxu0  ;;  %v946_v21 = vpop.f32.mrf.mxu1 }
  0xe1   :  { %v1329_v22 = vpop.f32.mrf.mxu0  ;;  %v447_v23 = vpop.f32.mrf.mxu1 }
  0xe3   :  { %v910_v24 = vpop.f32.mrf.mxu0  ;;  %v949_v25 = vpop.f32.mrf.mxu1 }
  0xe5   :  { %v327_v26 = vpop.f32.mrf.mxu0  ;;  %v457_v27 = vpop.f32.mrf.mxu1 }
  0xe7   :  { %v913_v28 = vpop.f32.mrf.mxu0  ;;  %v1331_v29 = vpop.f32.mrf.mxu1 }
  0xe9   :  { %v337_v30 = vpop.f32.mrf.mxu0  ;;  %v1333_v31 = vpop.f32.mrf.mxu1 }
  0xeb   :  { %v1335_v32 = vpop.f32.mrf.mxu0  ;;  %v1337_v33 = vpop.f32.mrf.mxu1 }
  0xed   :  { %v1339_v34 = vpop.f32.mrf.mxu0  ;;  %v1341_v35 = vpop.f32.mrf.mxu1 }
  0xee   :  { %1387 = vst [vmem:[#allocation3_spill] sm:$0xff] %v1339_v34 }
  0xef   :  { %v1343_v36 = vpop.f32.mrf.mxu0  ;;  %v958_v37 = vpop.f32.mrf.mxu1 }
  0xf1   :  { %v1345_v38 = vpop.f32.mrf.mxu0  ;;  %v1347_v39 = vpop.f32.mrf.mxu1 }
  0xf3   :  { %v922_v40 = vpop.f32.mrf.mxu0  ;;  %v961_v41 = vpop.f32.mrf.mxu1 }
  0xf4   :  { %v545_v6 = vmax.f32 %v943_v17, %v961_v41  ;;  %v602_v41 = vpop.permute.xlu0 %601 }
  0xf5   :  { %v367_v42 = vpop.f32.mrf.mxu0  ;;  %v497_v43 = vpop.f32.mrf.mxu1 }
  0xf7   :  { %v925_v45 = vpop.f32.mrf.mxu0  ;;  %v964_v46 = vpop.f32.mrf.mxu1 }
  0xf8   :  { %v547_v58 = vmax.f32 %v946_v21, %v964_v46  ;;  %v533_v62 = vmax.f32 %v907_v20, %v925_v45  ;;  %v531_v21 = vmax.f32 %v1323_v16, %v922_v40  ;;  %v542_v16 = vmax.f32 %v1321_v15, %v1347_v39 }
  0xf9   :  { %v377_v48 = vpop.f32.mrf.mxu0  ;;  %v507_v49 = vpop.f32.mrf.mxu1 }
  0xfa   :  { %v546_v63 = vmax.f32 %v447_v23, %v507_v49  ;;  %v532_v7 = vmax.f32 %v1329_v22, %v377_v48  ;;  %v592_v48 = vpop.permute.xlu0 %591 }
  0xfb   :  { %v928_v50 = vpop.f32.mrf.mxu0  ;;  %v967_v51 = vpop.f32.mrf.mxu1 }
  0xfc   :  { %v535_v55 = vmax.f32 %v910_v24, %v928_v50  ;;  %v549_v59 = vmax.f32 %v949_v25, %v967_v51  ;;  %v607_v50 = vpop.permute.xlu1 %606  ;;  %v544_v25 = vmax.f32 %v1327_v19, %v497_v43 }
  0xfd   :  { %v387_v53 = vpop.f32.mrf.mxu0  ;;  %v517_v56 = vpop.f32.mrf.mxu1 }
  0xfe   :  { %v534_v60 = vmax.f32 %v327_v26, %v387_v53  ;;  %v559_v1 = vmax.f32 %v535_v55, %v547_v58  ;;  %v548_v2 = vmax.f32 %v457_v27, %v517_v56  ;;  %v557_v26 = vmax.f32 %v533_v62, %v545_v6 }
  0xff   :  { %v931_v57 = vpop.f32.mrf.mxu0  ;;  %v543_v27 = vmax.f32 %v1317_v13, %v958_v37  ;;  %v556_v45 = vmax.f32 %v532_v7, %v544_v25  ;;  %v541_v13 = vmax.f32 %v1309_v9, %v1337_v33  ;;  %v527_v33 = vmax.f32 %v1307_v8, %v1335_v32 }
 0x100   :  { %v537_v61 = vmax.f32 %v913_v28, %v931_v57  ;;  %v558_v10 = vmax.f32 %v534_v60, %v546_v63  ;;  %v643_v28 = vadd.f32 %v622_v47, %v559_v1  ;;  %v641_v40 = vadd.f32 %v612_v5, %v557_v26  ;;  %v582_v57 = vpop.permute.xlu0 %581 }
 0x101   :  { %v397_v0 = vpop.f32.mrf.mxu0  ;;  %v555_v19 = vmax.f32 %v531_v21, %v543_v27 }
 0x102   :  { %v561_v3 = vmax.f32 %v537_v61, %v549_v59  ;;  %v536_v4 = vmax.f32 %v337_v30, %v397_v0  ;;  %v530_v30 = vmax.f32 %v1325_v18, %v367_v42  ;;  %v642_v22 = vadd.f32 %v617_v54, %v558_v10  ;;  %v597_v18 = vpop.permute.xlu1 %596  ;;  %v659_v0 = vld [vmem:[%s1384_s3 + $0x8] sm:$0xf] }
 0x103   :  { %v934_v46 = vpop.f32.mrf.mxu0  ;;  %v528_v10 = vmax.f32 %v1319_v14, %v1345_v38  ;;  %v540_v42 = vmax.f32 %v1313_v11, %v1341_v35  ;;  %v653_v47 = vmax.f32 %v641_v40, 0.0  ;;  %v639_v9 = vadd.f32 %v602_v41, %v555_v19  ;;  %v1388_v35 = vld [vmem:[#allocation3_spill] sm:$0xff] }
 0x104   :  { %v560_v34 = vmax.f32 %v536_v4, %v548_v2  ;;  %v645_v24 = vadd.f32 %v632_v44, %v561_v3  ;;  %v529_v44 = vmax.f32 %v1315_v12, %v1343_v36  ;;  %v554_v37 = vmax.f32 %v530_v30, %v542_v16  ;;  %v665_v4 = vpop.permute.xlu0 %664 }
 0x105   :  { %v654_v12 = vmax.f32 %v642_v22, 0.0  ;;  %v640_v36 = vadd.f32 %v607_v50, %v556_v45  ;;  %v407_v15 = vpop.f32.mrf.mxu0  ;;  %v539_v43 = vmax.f32 %v934_v46, %v1331_v29  ;;  %v552_v14 = vmax.f32 %v528_v10, %v540_v42 }
 0x106   :  { %v657_v20 = vmax.f32 %v645_v24, 0.0  ;;  %v644_v23 = vadd.f32 %v627_v52, %v560_v34  ;;  %v655_v34 = vmax.f32 %v643_v28, 0.0  ;;  %v553_v39 = vmax.f32 %v529_v44, %v541_v13  ;;  %v587_v11 = vpop.permute.xlu1 %586  ;;  %v1389_v52 = vld [vmem:[#allocation2_spill] sm:$0xff] }
 0x107   :  { %v538_v38 = vmax.f32 %v407_v15, %v1333_v31  ;;  %v652_v49 = vmax.f32 %v640_v36, 0.0  ;;  %v638_v51 = vadd.f32 %v597_v18, %v554_v37  ;;  %v526_v53 = vmax.f32 %v1389_v52, %v1388_v35 }
 0x108   :  { %968 = vmatprep.subr.mxu1 %v657_v20  ;;  %v656_v17 = vmax.f32 %v644_v23, 0.0  ;;  %v637_v29 = vadd.f32 %v592_v48, %v553_v39  ;;  %v551_v54 = vmax.f32 %v527_v33, %v539_v43  ;;  %v651_v55 = vmax.f32 %v639_v9, 0.0 }
 0x109   :  { %969 = vmatpush3.msra.mxu1 %v657_v20  ;;  %v636_v56 = vadd.f32 %v587_v11, %v552_v14  ;;  %v550_v8 = vmax.f32 %v526_v53, %v538_v38  ;;  %v650_v32 = vmax.f32 %v638_v51, 0.0 }
 0x10a   :  { %970 = vmatprep.subr.mxu1 %v656_v17  ;;  %v649_v31 = vmax.f32 %v637_v29, 0.0  ;;  %v635_v58 = vadd.f32 %v582_v57, %v551_v54  ;;  %v577_v59 = vpop.permute.xlu1 %576 }
 0x10b   :  { %971 = vmatpush3.msra.mxu1 %v656_v17  ;;  %v648_v60 = vmax.f32 %v636_v56, 0.0  ;;  %v634_v61 = vadd.f32 %v577_v59, %v550_v8 }
 0x10c   :  { %972 = vmatprep.subr.mxu1 %v655_v34  ;;  %v647_v62 = vmax.f32 %v635_v58, 0.0 }
 0x10d   :  { %973 = vmatpush3.msra.mxu1 %v655_v34  ;;  %v646_v63 = vmax.f32 %v634_v61, 0.0 }
 0x10e   :  { %974 = vmatprep.subr.mxu1 %v654_v12  ;;  %v670_v1 = vpop.permute.xlu1 %669 }
 0x10f   :  { %975 = vmatpush3.msra.mxu1 %v654_v12 }
 0x110   :  { %976 = vmatprep.subr.mxu1 %v653_v47 }
 0x111   :  { %977 = vmatpush3.msra.mxu1 %v653_v47 }
 0x112   :  { %978 = vmatprep.subr.mxu1 %v652_v49 }
 0x113   :  { %979 = vmatpush3.msra.mxu1 %v652_v49 }
 0x114   :  { %980 = vmatprep.subr.mxu1 %v651_v55 }
 0x115   :  { %981 = vmatpush3.msra.mxu1 %v651_v55 }
 0x116   :  { %982 = vmatprep.subr.mxu1 %v650_v32 }
 0x117   :  { %983 = vmatpush3.msra.mxu1 %v650_v32 }
 0x118   :  { %984 = vmatprep.subr.mxu1 %v649_v31 }
 0x119   :  { %985 = vmatpush3.msra.mxu1 %v649_v31 }
 0x11a   :  { %986 = vmatprep.subr.mxu1 %v648_v60 }
 0x11b   :  { %987 = vmatpush3.msra.mxu1 %v648_v60 }
 0x11c   :  { %988 = vmatprep.subr.mxu1 %v647_v62 }
 0x11d   :  { %989 = vmatpush3.msra.mxu1 %v647_v62 }
 0x11e   :  { %990 = vmatprep.subr.mxu1 %v646_v63 }
 0x11f   :  { %991 = vmatpush3.msra.mxu1 %v646_v63 }
 0x120   :  { %993 = vmatmul.mubr.msk.f32.vlgmr.msra.gmra.mxu1 %vm672_vm1, %v659_v0 }
 0x1e0   :  { %v994_v2 = vpop.f32.mrf.mxu1 }
 0x1e1   :  { %v751_v3 = vadd.f32 %v994_v2, %v670_v1 }
 0x1e2   :  { %v745_v5 = vpop.f32.mrf.mxu1 }
 0x1e3   :  { %755 = vst [vmem:[%s1385_s5 + $0x8] sm:$0xf] %v751_v3  ;;  %v746_v6 = vadd.f32 %v745_v5, %v665_v4 }
 0x1e5   :  { %754 = vst [vmem:[%s1385_s5] sm:$0xff] %v746_v6 }

</bundles_post_ra>
